<compile_context>
chip_gen: v5e
topology: v5e:2x2
jax: 0.10.0
libtpu: 0.0.40
codegen_flags: <defaults>
</compile_context>

<pallas_src>
import functools

import jax
import jax.numpy as jnp
from jax.experimental import pallas as pl
from jax.experimental.pallas import tpu as pltpu


def _round_up(x: int, m: int) -> int:
    return ((x + m - 1) // m) * m


def _sublane_multiple(dtype) -> int:
    itemsize = jnp.dtype(dtype).itemsize
    if itemsize >= 4:
        return 8
    if itemsize == 2:
        return 16
    return 32


def _tile_and_pad(dim: int, tile: int, align: int):
    """Pick a tile for `dim`. If it fits in one tile, use the full (possibly
    unaligned) dim as the block size — no padding needed. Otherwise round the
    tile to `align` and pad the dim up to a multiple of it."""
    if dim <= tile:
        return dim, dim, False
    t = _round_up(min(tile, dim), align)
    p = _round_up(dim, t)
    return t, p, p != dim


def prepare_params(weight, bias):
    """One-time parameter transform (do this at init, not per forward call).

    torch nn.Linear stores weight as [N, K]; transpose to [K, N] so the MXU
    sees the contraction dim in its natural position, and reshape bias to a
    [1, N] row for lane-wise broadcast inside the kernel."""
    return jnp.asarray(weight).T, jnp.asarray(bias)[None, :]


def _linear_relu_kernel_single(x_ref, w_ref, b_ref, o_ref):
    # Whole K contracted in one shot: no accumulator scratch, no init/finalize.
    acc = jnp.dot(x_ref[...], w_ref[...], preferred_element_type=jnp.float32)
    acc = acc + b_ref[...].astype(jnp.float32)
    o_ref[...] = jnp.maximum(acc, 0.0).astype(o_ref.dtype)


def _linear_relu_kernel_acc(x_ref, w_ref, b_ref, o_ref, acc_ref):
    # x_ref: (tm, tk)  w_ref: (tk, tn)  b_ref: (1, tn)
    # o_ref: (tm, tn)  acc_ref: (tm, tn) f32 scratch, live across the K axis.
    k = pl.program_id(2)

    @pl.when(k == 0)
    def _():
        acc_ref[...] = jnp.zeros_like(acc_ref)

    acc_ref[...] += jnp.dot(x_ref[...], w_ref[...],
                            preferred_element_type=jnp.float32)

    @pl.when(k == pl.num_programs(2) - 1)
    def _():
        acc = acc_ref[...] + b_ref[...].astype(jnp.float32)
        o_ref[...] = jnp.maximum(acc, 0.0).astype(o_ref.dtype)


@functools.partial(jax.jit, static_argnames=("tm", "tn", "tk"))
def linear_relu(x, w_kn, b_row, *, tm=512, tn=512, tk=1024):
    """y = relu(x @ w_kn + b_row).

    x: [M, K], w_kn: [K, N] (pre-transposed via prepare_params), b_row: [1, N].
    """
    M, K = x.shape
    Kw, N = w_kn.shape
    assert K == Kw, "weight shape mismatch"
    assert x.dtype == w_kn.dtype, (
        "x and weight dtypes must match so the MXU path / tiling is predictable")
    out_dtype = x.dtype
    sub = _sublane_multiple(x.dtype)

    # --- Tile selection (full-dim blocks when a dim fits in one tile). -----
    tm_, Mp, pad_m = _tile_and_pad(M, tm, sub)
    tk_, Kp, pad_k = _tile_and_pad(K, tk, 128)
    tn_, Np, pad_n = _tile_and_pad(N, tn, 128)

    # --- v7x has 2 TensorCores per chip: make sure the (M, N) grid has at
    #     least 2 points when the alignment allows it, so "parallel" axes can
    #     actually be sharded across cores. --------------------------------
    if Mp // tm_ == 1 and Np // tn_ == 1:
        if N >= 256 and N % 256 == 0:
            tn_ = N // 2
        elif M >= 2 * sub and M % (2 * sub) == 0:
            tm_ = M // 2

    # --- Zero-pad only when a split dim is not divisible (never on the toy
    #     shape; at real sizes pad weight/bias once at init instead). -------
    xp = x
    if pad_m or pad_k:
        xp = jnp.zeros((Mp, Kp), x.dtype).at[:M, :K].set(x)
    wp = w_kn
    if pad_k or pad_n:
        wp = jnp.zeros((Kp, Np), w_kn.dtype).at[:K, :N].set(w_kn)
    bp = b_row
    if pad_n:
        bp = jnp.zeros((1, Np), b_row.dtype).at[:, :N].set(b_row)

    gm, gn, gk = Mp // tm_, Np // tn_, Kp // tk_

    # --- VMEM budget: double-buffered x/w/out tiles (+acc when K is split);
    #     cap at a v7x-safe ceiling (64 MiB physical per TC there). ---------
    in_item = jnp.dtype(x.dtype).itemsize
    out_item = jnp.dtype(out_dtype).itemsize
    est = 2 * (tm_ * tk_ + tk_ * tn_ + tn_) * in_item + 2 * tm_ * tn_ * out_item
    if gk > 1:
        est += tm_ * tn_ * 4
    vmem_limit = min(48 * 1024 * 1024, max(32 * 1024 * 1024, 2 * est))

    cost = pl.CostEstimate(
        flops=2 * M * K * N,
        transcendentals=0,
        bytes_accessed=(x.size * in_item
                        + w_kn.size * in_item
                        + b_row.size * jnp.dtype(b_row.dtype).itemsize
                        + M * N * out_item),
    )

    out_shape = jax.ShapeDtypeStruct((Mp, Np), out_dtype)

    if gk == 1:
        # K fits in a single block: no accumulator scratch, 2-D grid.
        out_p = pl.pallas_call(
            _linear_relu_kernel_single,
            out_shape=out_shape,
            grid_spec=pltpu.PrefetchScalarGridSpec(
                num_scalar_prefetch=0,
                grid=(gm, gn),
                in_specs=[
                    pl.BlockSpec((tm_, Kp), lambda i, j: (i, 0)),   # x
                    pl.BlockSpec((Kp, tn_), lambda i, j: (0, j)),   # w [K, N]
                    pl.BlockSpec((1, tn_), lambda i, j: (0, j)),    # bias
                ],
                out_specs=pl.BlockSpec((tm_, tn_), lambda i, j: (i, j)),
            ),
            compiler_params=pltpu.CompilerParams(
                dimension_semantics=("parallel", "parallel"),
                vmem_limit_bytes=vmem_limit),
            cost_estimate=cost,
        )(xp, wp, bp)
    else:
        out_p = pl.pallas_call(
            _linear_relu_kernel_acc,
            out_shape=out_shape,
            grid_spec=pltpu.PrefetchScalarGridSpec(
                num_scalar_prefetch=0,
                grid=(gm, gn, gk),
                in_specs=[
                    pl.BlockSpec((tm_, tk_), lambda i, j, k: (i, k)),  # x
                    pl.BlockSpec((tk_, tn_), lambda i, j, k: (k, j)),  # w [K, N]
                    pl.BlockSpec((1, tn_), lambda i, j, k: (0, j)),    # bias
                ],
                out_specs=pl.BlockSpec((tm_, tn_), lambda i, j, k: (i, j)),
                scratch_shapes=[pltpu.VMEM((tm_, tn_), jnp.float32)],
            ),
            compiler_params=pltpu.CompilerParams(
                dimension_semantics=("parallel", "parallel", "arbitrary"),
                vmem_limit_bytes=vmem_limit),
            cost_estimate=cost,
        )(xp, wp, bp)

    if pad_m or pad_n:
        out_p = out_p[:M, :N]
    return out_p


if __name__ == "__main__":
    # SampleModule(in_features=32, out_features=32) applied to x: [8, 32]
    in_features, out_features, batch = 32, 32, 8

    key = jax.random.PRNGKey(0)
    kx, kw, kb = jax.random.split(key, 3)
    x = jax.random.normal(kx, (batch, in_features), dtype=jnp.float32)
    # Deterministic parameter init (torch-Linear-like uniform bound)
    bound = 1.0 / (in_features ** 0.5)
    weight = jax.random.uniform(kw, (out_features, in_features),
                                minval=-bound, maxval=bound, dtype=jnp.float32)
    bias = jax.random.uniform(kb, (out_features,),
                              minval=-bound, maxval=bound, dtype=jnp.float32)

    # One-time parameter prep (transpose to [K, N], bias -> [1, N]).
    w_kn, b_row = prepare_params(weight, bias)

    out = jax.block_until_ready(linear_relu(x, w_kn, b_row))
    ref = jnp.maximum(x @ weight.T + bias, 0.0)
    assert out.shape == ref.shape, "shape mismatch vs reference"
    assert jnp.allclose(out, ref, atol=1e-5, rtol=1e-5), "mismatch vs reference"

    # Also exercise the K-split accumulator path + padding fallback at a small
    # non-aligned shape, to make sure the general path stays correct.
    k2x, k2w, k2b = jax.random.split(jax.random.PRNGKey(1), 3)
    M2, K2, N2 = 16, 300, 64
    x2 = jax.random.normal(k2x, (M2, K2), dtype=jnp.float32)
    w2 = jax.random.normal(k2w, (N2, K2), dtype=jnp.float32) * 0.05
    b2 = jax.random.normal(k2b, (N2,), dtype=jnp.float32)
    w2_kn, b2_row = prepare_params(w2, b2)
    out2 = jax.block_until_ready(
        linear_relu(x2, w2_kn, b2_row, tm=128, tn=128, tk=128))
    ref2 = jnp.maximum(x2 @ w2.T + b2, 0.0)
    assert out2.shape == ref2.shape, "shape mismatch vs reference (split-K)"
    assert jnp.allclose(out2, ref2, atol=1e-4, rtol=1e-4), "mismatch (split-K)"

    # TODO(synk): optionally cast x/weight to bf16 on v5e for ~2x MXU/HBM
    # throughput (accumulation already f32 via preferred_element_type).
    print("KERNEL_OK")
</pallas_src>

<mosaic_0001>
module attributes {stable_mosaic.version = 11 : i64} {
  func.func @_linear_relu_kernel_single(%arg0: i32, %arg1: i32, %arg2: memref<8x32xf32, #tpu.memory_space<vmem>>, %arg3: memref<32x32xf32, #tpu.memory_space<vmem>>, %arg4: memref<1x32xf32, #tpu.memory_space<vmem>>, %arg5: memref<8x32xf32, #tpu.memory_space<vmem>>) attributes {dimension_semantics = [#tpu.dimension_semantics<parallel>, #tpu.dimension_semantics<parallel>], iteration_bounds = array<i64: 1, 1>, scalar_prefetch = 0 : i64, scratch_operands = 0 : i64, tpu.core_type = #tpu.core_type<tc>, window_params = [{transform_indices = @transform_0, window_bounds = array<i64: 8, 32>}, {transform_indices = @transform_1, window_bounds = array<i64: 32, 32>}, {transform_indices = @transform_2, window_bounds = array<i64: 1, 32>}, {transform_indices = @transform_3, window_bounds = array<i64: 8, 32>}]} {
    %c0 = arith.constant 0 : index
    %c0_0 = arith.constant 0 : index
    %0 = vector.load %arg2[%c0, %c0_0] : memref<8x32xf32, #tpu.memory_space<vmem>>, vector<8x32xf32>
    %c0_1 = arith.constant 0 : index
    %c0_2 = arith.constant 0 : index
    %1 = vector.load %arg3[%c0_1, %c0_2] : memref<32x32xf32, #tpu.memory_space<vmem>>, vector<32x32xf32>
    %cst = arith.constant dense<0.000000e+00> : vector<8x32xf32>
    %2 = tpu.matmul %0, %1, %cst {dimension_numbers = #tpu.dot_dimension_numbers<[1], [0], [0], [1], [0, 0, 1, 1], [], []>} : vector<8x32xf32>, vector<32x32xf32>, vector<8x32xf32> -> vector<8x32xf32>
    %c0_3 = arith.constant 0 : index
    %c0_4 = arith.constant 0 : index
    %3 = vector.load %arg4[%c0_3, %c0_4] : memref<1x32xf32, #tpu.memory_space<vmem>>, vector<1x32xf32>
    %4 = vector.broadcast %3 : vector<1x32xf32> to vector<8x32xf32>
    %5 = arith.addf %2, %4 : vector<8x32xf32>
    %cst_5 = arith.constant 0.000000e+00 : f32
    %6 = vector.broadcast %cst_5 : f32 to vector<8x32xf32>
    %7 = arith.maximumf %5, %6 : vector<8x32xf32>
    %c0_6 = arith.constant 0 : index
    %c0_7 = arith.constant 0 : index
    %8 = vector.load %arg5[%c0_6, %c0_7] : memref<8x32xf32, #tpu.memory_space<vmem>>, vector<8x32xf32>
    tpu.vector_store %arg5[%c0_6, %c0_7], %7 {strides = array<i32>} : memref<8x32xf32, #tpu.memory_space<vmem>>, vector<8x32xf32>,
    return
  }
  func.func @transform_0(%arg0: i32, %arg1: i32) -> (i32, i32) {
    %c0_i32 = arith.constant 0 : i32
    %c0_i32_0 = arith.constant 0 : i32
    return %arg0, %c0_i32 : i32, i32
  }
  func.func @transform_1(%arg0: i32, %arg1: i32) -> (i32, i32) {
    %c0_i32 = arith.constant 0 : i32
    %c0_i32_0 = arith.constant 0 : i32
    return %c0_i32, %arg1 : i32, i32
  }
  func.func @transform_2(%arg0: i32, %arg1: i32) -> (i32, i32) {
    %c0_i32 = arith.constant 0 : i32
    %c0_i32_0 = arith.constant 0 : i32
    return %c0_i32, %arg1 : i32, i32
  }
  func.func @transform_3(%arg0: i32, %arg1: i32) -> (i32, i32) {
    %c0_i32 = arith.constant 0 : i32
    return %arg0, %arg1 : i32, i32
  }
}

</mosaic_0001>

<bundles_post_ra>
// kernel: linear_relu.1
= control target key start
LH: loop header
LB: loop body
LE: loop exit
PB: predicated region body
PF: predicated region fallthrough
CT: control target
= control target key end

     0   :  { %8 = vsyncpa [#allocation3], 0  ;;  %s220_s0 = inlined_call_operand.hbm [shape: f32[8,32], index: 0, kind: input, shape index: {}]   ;;  %s221_s1 = inlined_call_operand.hbm [shape: f32[32,32], index: 1, kind: input, shape index: {}]   ;;  %s222_s2 = inlined_call_operand.vmem [shape: f32[1,32], index: 2, kind: input, shape index: {}]   ;;  %s223_s3 = inlined_call_operand.hbm [shape: f32[8,32], index: 3, kind: output, shape index: {}]  }
   0x1   :  { %9 = vsyncpa [#allocation6], 0 }
   0x2   :  { %10 = vsyncpa [#allocation4], 0  ;;  %s16_s14 = sshll.u32 %s220_s0, 4  ;;  %s183_s15 = smov [#allocation2]   ;;  %s17_s14 = int_to_ptr.hbm [resolvable:$true] %s16_s14 }
   0x3   :  { %s18_s16 = sshll.u32 %s183_s15, 4  ;;  %s26_s19 = sshll.u32 %s221_s1, 4  ;;  %s19_s16 = int_to_ptr.vmem [resolvable:$true] %s18_s16  ;;  %s27_s19 = int_to_ptr.hbm [resolvable:$true] %s26_s19 }
   0x4   :  { %21 = dma.hbm_to_vmem [thread:$0]  %s17_s14, 128, %s19_s16, [#allocation3]  }
   0x5   :  { %s184_s20 = smov [#allocation5]   ;;  %s185_s22 = smov 128  }
   0x6   :  { %s28_s21 = sshll.u32 %s184_s20, 4  ;;  %s186_s23 = smov 8   ;;  %s29_s21 = int_to_ptr.vmem [resolvable:$true] %s28_s21 }
   0x7   :  { %34 = dma.hbm_to_vmem [thread:$0]  %s27_s19, 512, %s29_s21, [#allocation6], %s185_s22, %s185_s22, %s186_s23  }
   0x8   :  { %177 = dma.done.wait [#allocation3], 128  }
   0x9   :  { %178 = vsyncadd [#allocation3], 4294967168 }
   0xa   :  { %179 = dma.done.wait [#allocation6], 512  }
   0xb   :  { %180 = vsyncadd [#allocation6], 4294966784  ;;  %v49_v0 = vld [vmem:[#allocation5 + $0x18] sm:$0xff]  ;;  %v48_v1 = vld [vmem:[#allocation5 + $0x10] sm:$0xff]  ;;  %vm54_vm0 = vcmask 261120   ;;  %s187_s24 = smov [#allocation7]  }
   0xc   :  { %70 = vmatpush.msra.mxu0 %v49_v0  ;;  %v47_v2 = vld [vmem:[#allocation5 + $0x8] sm:$0xff]  ;;  %v46_v3 = vld [vmem:[#allocation5] sm:$0xff]  ;;  %v45_v4 = vld [vmem:[#allocation2] sm:$0xff]  ;;  %s85_s25 = sshll.u32 %s187_s24, 4  ;;  %s87_s28 = sshll.u32 %s223_s3, 4  ;;  %s86_s25 = int_to_ptr.vmem [resolvable:$true] %s85_s25  ;;  %s88_s28 = int_to_ptr.hbm [resolvable:$true] %s87_s28 }
   0xd   :  { %v104_v5 = vld [vmem:[%s222_s2] ss:$0 sm:$0xff] }
   0xe   :  { %71 = vmatpush.msra.mxu0 %v48_v1 }
  0x10   :  { %72 = vmatpush.msra.mxu0 %v47_v2 }
  0x12   :  { %73 = vmatpush.msra.mxu0 %v46_v3 }
  0x13   :  { %98 = vmatmul.msk.f32.vlgmr.msra.gmra.mxu0 %vm54_vm0, %v45_v4 }
  0x90   :  { %v75_v6 = vpop.f32.mrf.mxu0 }
  0x91   :  { %v76_v7 = vadd.f32 %v104_v5, %v75_v6 }
  0x93   :  { %v78_v8 = vmax.f32 %v76_v7, 0.0 }
  0x95   :  { %79 = vst.msk [vmem:[#allocation7] sm:$0xff] %vm54_vm0, %v78_v8 }
  0x96   :  { %90 = dma.vmem_to_hbm [thread:$0]  %s86_s25, 128, %s88_s28, [#allocation4]  }
  0x97   :  { %181 = dma.done.wait [#allocation4], 128  }
  0x98   :  { %182 = vsyncadd [#allocation4], 4294967168 }
  0x99   :  { %95 = vsyncpa [#allocation3], 1 }
  0x9a   :  { %96 = vsyncpa [#allocation6], 1 }
  0x9b   :  { %97 = vsyncpa [#allocation4], 1 }

</bundles_post_ra>
